<compile_context>
chip_gen: v7x
topology: tpu7x:2x2x1
jax: 0.10.0
libtpu: 0.0.40
codegen_flags: <defaults>
</compile_context>

<pallas_src>
import jax
import jax.numpy as jnp
from jax import lax
from jax.experimental import pallas as pl
from jax.experimental.pallas import tpu as pltpu


# -----------------------------------------------------------------------------
# Pallas kernel:
#   out = x @ W1
#       + onehot(pos | 100+lvl) @ proj_table      (PE + hierarchy gather, MXU)
#       + deg * (wc @ W2)                          (rank-1 centrality, VPU)
# (bias bc@W2 + b_combine is folded into the PE rows of proj_table)
# -----------------------------------------------------------------------------
def spe_kernel(x_ref, idx_ref, deg_ref, w1_ref, table_ref, wc2_ref, o_ref):
    tm = x_ref.shape[0]
    tbl = table_ref.shape[0]

    # fp32 MXU matmul (kernel is HBM-bound; bf16 operands buy nothing here).
    xw = jnp.dot(x_ref[...], w1_ref[...], preferred_element_type=jnp.float32)

    # Both gathers at once via a single one-hot matmul on the idle MXU:
    # column idx[:,0] = intra-graph position (PE row, bias folded in),
    # column idx[:,1] = 100 + hierarchy level (hierarchy row).
    idx = idx_ref[...]                                           # (tm, 2) int32
    lanes = lax.broadcasted_iota(jnp.int32, (tm, tbl), 1)
    onehot = ((lanes == idx[:, 0:1]) | (lanes == idx[:, 1:2])).astype(jnp.float32)
    gathered = jnp.dot(onehot, table_ref[...],
                       preferred_element_type=jnp.float32)       # (tm, D)

    out = xw + gathered + deg_ref[...] * wc2_ref[...]
    o_ref[...] = out.astype(o_ref.dtype)


def _pick_tile(n, d):
    """Row-tile for the node streams.

    The Pallas path only runs above the size gate, so we can afford >=4 grid
    steps (shards the mem-bound stream across v7x's two TensorCores; the extra
    ~0.35us/step is negligible on 1-TC v5e/v6e).  The cap keeps double-buffered
    x/out tiles well inside VMEM when D grows (matters on v7x's 64 MiB).
    """
    if n <= 8:
        return max(n, 1)
    cap = 1024
    while cap > 8 and cap * d * 4 * 6 > (12 << 20):
        cap //= 2
    tm = 8
    for cand in (1024, 512, 256, 128, 64, 32, 16, 8):
        if cand <= cap and pl.cdiv(n, cand) >= 4:
            tm = cand
            break
    return tm


def spe_pallas(x, idx, deg_norm, w1, table, wc2):
    N, D = x.shape
    T = table.shape[0]
    tm = _pick_tile(N, D)

    node = lambda i: (i, 0)
    inv = lambda i: (0, 0)

    return pl.pallas_call(
        spe_kernel,
        out_shape=jax.ShapeDtypeStruct((N, D), x.dtype),
        grid=(pl.cdiv(N, tm),),                 # boundary block masked by Pallas
        in_specs=[
            pl.BlockSpec((tm, D), node),        # x
            pl.BlockSpec((tm, 2), node),        # [position, 100 + level] int32
            pl.BlockSpec((tm, 1), node),        # normalized degree
            pl.BlockSpec((D, D), inv),          # W1 (invariant)
            pl.BlockSpec((T, D), inv),          # projected PE+hier table (invariant)
            pl.BlockSpec((1, D), inv),          # wc @ W2 (invariant)
        ],
        out_specs=pl.BlockSpec((tm, D), node),
        compiler_params=pltpu.CompilerParams(dimension_semantics=("parallel",)),
    )(x, idx, deg_norm, w1, table, wc2)


def _spe_xla(x, idx, deg_norm, w1, table, wc2):
    # Fused plain-XLA path for tiny problems (pallas_call fixed cost dominates).
    gathered = table[idx[:, 0]] + table[idx[:, 1]]
    return (x @ w1 + gathered + deg_norm * wc2).astype(x.dtype)


# -----------------------------------------------------------------------------
# Plain-JAX glue reproducing the PyTorch graph bookkeeping.
# -----------------------------------------------------------------------------
def intra_batch_positions(batch, num_nodes, max_nodes):
    # O(N) segment rank: position = node index - start index of its graph.
    # Assumes nodes of each graph are contiguous and batch ids sorted
    # (PyTorch-Geometric convention).  Positions are clipped to the PE table
    # size (PyTorch's nn.Embedding would raise on out-of-range indices).
    if batch is None:
        batch = jnp.zeros((num_nodes,), dtype=jnp.int32)
    seg_start = jnp.searchsorted(batch, batch, side="left").astype(jnp.int32)
    pos = jnp.arange(num_nodes, dtype=jnp.int32) - seg_start
    return jnp.clip(pos, 0, max_nodes - 1).astype(jnp.int32)


def node_degree(edge_index, num_nodes):
    flat = edge_index.reshape(-1)
    deg = jnp.zeros((num_nodes,), jnp.float32).at[flat].add(1.0)
    return (deg / (deg.max() + 1e-8))[:, None]               # [N, 1]


def hierarchy_levels(edge_index, part_of_mask, num_nodes):
    # Iterative level propagation along part-of edges (matches the torch loop).
    lvl = jnp.zeros((num_nodes,), jnp.int32)
    src, dst = edge_index[0], edge_index[1]
    for i in range(9):
        active = (lvl[src] == i) & part_of_mask
        updates = jnp.where(active, i + 1, 0).astype(jnp.int32)
        proposed = jnp.zeros((num_nodes,), jnp.int32).at[dst].max(updates)
        lvl = jnp.maximum(lvl, proposed)
    return lvl


def precompute_tables(params):
    # One-time algebraic precompute (tiny matmuls on the parameter tables).
    w1, w2, w3 = params["w1"], params["w2"], params["w3"]
    bias = params["bc"] @ w2 + params["bcomb"]                # [1, D]
    pe_proj = params["pe_table"] @ w1 + bias                  # bias folded in
    hier_proj = params["hier_table"] @ w3                     # [10, D]
    wc2 = params["wc"] @ w2                                   # [1, D]

    n_pe, D = pe_proj.shape
    n_h = hier_proj.shape[0]
    tbl_rows = max(128, int(pl.next_power_of_2(n_pe + n_h)))  # pad to MXU-friendly K
    table = jnp.zeros((tbl_rows, D), pe_proj.dtype)
    table = table.at[:n_pe].set(pe_proj).at[n_pe:n_pe + n_h].set(hier_proj)
    return w1, table, wc2


_MIN_PALLAS_ELEMS = 64 * 1024   # below this, fused XLA beats pallas_call overhead


def structural_positional_encoding(params, x, edge_index, part_of_mask=None,
                                   batch=None, force_pallas=None):
    N, D = x.shape
    max_nodes = params["pe_table"].shape[0]

    positions = intra_batch_positions(batch, N, max_nodes)
    deg_norm = node_degree(edge_index, N)                     # [N, 1]
    if part_of_mask is not None:
        lvl = hierarchy_levels(edge_index, part_of_mask, N)
    else:
        lvl = jnp.zeros((N,), jnp.int32)

    w1, table, wc2 = precompute_tables(params)
    # col 0: PE row, col 1: hierarchy row (offset past the PE rows).
    idx = jnp.stack([positions, lvl + max_nodes], axis=1).astype(jnp.int32)

    if force_pallas is None:
        use_pallas = N * D >= _MIN_PALLAS_ELEMS
    else:
        use_pallas = bool(force_pallas)

    if use_pallas:
        return spe_pallas(x, idx, deg_norm, w1, table, wc2)
    return _spe_xla(x, idx, deg_norm, w1, table, wc2)


def reference(params, x, edge_index, part_of_mask, batch):
    """Pure-JAX fp32 reference of the original forward pass."""
    N, D = x.shape
    max_nodes = params["pe_table"].shape[0]
    positions = intra_batch_positions(batch, N, max_nodes)
    basic = x + params["pe_table"][positions]
    deg = node_degree(edge_index, N)
    cent = deg * params["wc"] + params["bc"]
    lvl = hierarchy_levels(edge_index, part_of_mask, N)
    hier = params["hier_table"][lvl]
    combined = jnp.concatenate([basic, cent, hier], axis=-1)
    W = jnp.concatenate([params["w1"], params["w2"], params["w3"]], axis=0)  # [3D, D]
    return combined @ W + params["bcomb"]


# -----------------------------------------------------------------------------
# Deterministic parameter init + example run
# -----------------------------------------------------------------------------
def init_params(key, dim, max_nodes=100):
    ks = jax.random.split(key, 6)
    scale = 0.05
    return {
        "pe_table":   scale * jax.random.normal(ks[0], (max_nodes, dim), jnp.float32),
        "hier_table": scale * jax.random.normal(ks[1], (10, dim), jnp.float32),
        # centrality Linear(1, dim): stored transposed as [1, dim]
        "wc":    scale * jax.random.normal(ks[2], (1, dim), jnp.float32),
        "bc":    scale * jax.random.normal(ks[3], (1, dim), jnp.float32),
        # combine Linear(3*dim, dim): weight.T split along input into 3 [dim, dim]
        "w1":    scale * jax.random.normal(ks[4], (dim, dim), jnp.float32),
        "w2":    scale * jax.random.normal(ks[5], (dim, dim), jnp.float32),
        "w3":    scale * jax.random.normal(jax.random.fold_in(key, 7), (dim, dim), jnp.float32),
        "bcomb": scale * jax.random.normal(jax.random.fold_in(key, 8), (1, dim), jnp.float32),
    }


if __name__ == "__main__":
    key = jax.random.PRNGKey(0)
    dim = 32
    n_graphs, nodes_per_graph = 4, 50
    num_nodes = n_graphs * nodes_per_graph      # 200: not a tile multiple -> exercises boundary masking
    num_edges = 400

    params = init_params(key, dim, max_nodes=100)

    kx, ke, km = jax.random.split(jax.random.fold_in(key, 99), 3)
    x = jax.random.normal(kx, (num_nodes, dim), jnp.float32)
    edge_index = jax.random.randint(ke, (2, num_edges), 0, num_nodes, dtype=jnp.int32)
    part_of_mask = jax.random.bernoulli(km, 0.4, (num_edges,))
    batch = jnp.repeat(jnp.arange(n_graphs, dtype=jnp.int32), nodes_per_graph)

    fwd = jax.jit(structural_positional_encoding, static_argnames=("force_pallas",))

    # Pallas path (forced; the size gate would route this small demo to XLA).
    out_pallas = jax.block_until_ready(
        fwd(params, x, edge_index, part_of_mask, batch, force_pallas=True))
    # Auto-gated path (small problem -> fused plain-XLA expression).
    out_auto = jax.block_until_ready(
        fwd(params, x, edge_index, part_of_mask, batch))

    ref = reference(params, x, edge_index, part_of_mask, batch)
    assert out_pallas.shape == (num_nodes, dim)
    assert jnp.allclose(out_pallas, ref, atol=1e-2, rtol=1e-2), (
        float(jnp.max(jnp.abs(out_pallas - ref))))
    assert jnp.allclose(out_auto, ref, atol=1e-2, rtol=1e-2), (
        float(jnp.max(jnp.abs(out_auto - ref))))

    print("KERNEL_OK")
</pallas_src>

<mosaic_0001>
module attributes {stable_mosaic.version = 11 : i64} {
  func.func private @main(%arg0: i32) attributes {dimension_semantics = [#tpu.dimension_semantics<core_parallel>], iteration_bounds = array<i64: 2>, tpu.core_type = #tpu.core_type<sc_scalar_subcore>, window_params = []} {
    return
  }
}

module attributes {stable_mosaic.version = 11 : i64} {
  func.func private @main(%arg0: i32) attributes {dimension_semantics = [#tpu.dimension_semantics<core_parallel>], iteration_bounds = array<i64: 2>, tpu.core_type = #tpu.core_type<sc_scalar_subcore>, window_params = []} {
    return
  }
}

module attributes {stable_mosaic.version = 11 : i64} {
  func.func @spe_kernel(%arg0: i32, %arg1: memref<64x32xf32, #tpu.memory_space<vmem>>, %arg2: memref<64x2xi32, #tpu.memory_space<vmem>>, %arg3: memref<64x1xf32, #tpu.memory_space<vmem>>, %arg4: memref<32x32xf32, #tpu.memory_space<vmem>>, %arg5: memref<128x32xf32, #tpu.memory_space<vmem>>, %arg6: memref<1x32xf32, #tpu.memory_space<vmem>>, %arg7: memref<64x32xf32, #tpu.memory_space<vmem>>) attributes {dimension_semantics = [#tpu.dimension_semantics<parallel>], iteration_bounds = array<i64: 4>, scalar_prefetch = 0 : i64, scratch_operands = 0 : i64, tpu.core_type = #tpu.core_type<tc>, window_params = [{transform_indices = @transform_0, window_bounds = array<i64: 64, 32>}, {transform_indices = @transform_1, window_bounds = array<i64: 64, 2>}, {transform_indices = @transform_2, window_bounds = array<i64: 64, 1>}, {pipeline_mode = #tpu.pipeline_mode<synchronous>, transform_indices = @transform_3, window_bounds = array<i64: 32, 32>}, {pipeline_mode = #tpu.pipeline_mode<synchronous>, transform_indices = @transform_4, window_bounds = array<i64: 128, 32>}, {pipeline_mode = #tpu.pipeline_mode<synchronous>, transform_indices = @transform_5, window_bounds = array<i64: 1, 32>}, {transform_indices = @transform_6, window_bounds = array<i64: 64, 32>}]} {
    %c0 = arith.constant 0 : index
    %c0_0 = arith.constant 0 : index
    %0 = vector.load %arg1[%c0, %c0_0] : memref<64x32xf32, #tpu.memory_space<vmem>>, vector<64x32xf32>
    %c0_1 = arith.constant 0 : index
    %c0_2 = arith.constant 0 : index
    %1 = vector.load %arg4[%c0_1, %c0_2] : memref<32x32xf32, #tpu.memory_space<vmem>>, vector<32x32xf32>
    %cst = arith.constant dense<0.000000e+00> : vector<64x32xf32>
    %2 = tpu.matmul %0, %1, %cst {dimension_numbers = #tpu.dot_dimension_numbers<[1], [0], [0], [1], [0, 0, 1, 1], [], []>} : vector<64x32xf32>, vector<32x32xf32>, vector<64x32xf32> -> vector<64x32xf32>
    %c0_3 = arith.constant 0 : index
    %c0_4 = arith.constant 0 : index
    %3 = vector.load %arg2[%c0_3, %c0_4] : memref<64x2xi32, #tpu.memory_space<vmem>>, vector<64x2xi32>
    %4 = tpu.iota {dimensions = array<i32: 1>} : vector<64x128xi32>
    %5 = vector.extract_strided_slice %3 {offsets = [0, 0], sizes = [64, 1], strides = [1, 1]} : vector<64x2xi32> to vector<64x1xi32>
    %6 = vector.broadcast %5 : vector<64x1xi32> to vector<64x128xi32>
    %7 = arith.cmpi eq, %4, %6 : vector<64x128xi32>
    %8 = vector.extract_strided_slice %3 {offsets = [0, 1], sizes = [64, 1], strides = [1, 1]} : vector<64x2xi32> to vector<64x1xi32>
    %9 = vector.broadcast %8 : vector<64x1xi32> to vector<64x128xi32>
    %10 = arith.cmpi eq, %4, %9 : vector<64x128xi32>
    %11 = arith.ori %7, %10 : vector<64x128xi1>
    %12 = arith.extui %11 : vector<64x128xi1> to vector<64x128xi32>
    %13 = arith.sitofp %12 : vector<64x128xi32> to vector<64x128xf32>
    %c0_5 = arith.constant 0 : index
    %c0_6 = arith.constant 0 : index
    %14 = vector.load %arg5[%c0_5, %c0_6] : memref<128x32xf32, #tpu.memory_space<vmem>>, vector<128x32xf32>
    %cst_7 = arith.constant dense<0.000000e+00> : vector<64x32xf32>
    %15 = tpu.matmul %13, %14, %cst_7 {dimension_numbers = #tpu.dot_dimension_numbers<[1], [0], [0], [1], [0, 0, 1, 1], [], []>} : vector<64x128xf32>, vector<128x32xf32>, vector<64x32xf32> -> vector<64x32xf32>
    %16 = arith.addf %2, %15 : vector<64x32xf32>
    %c0_8 = arith.constant 0 : index
    %c0_9 = arith.constant 0 : index
    %17 = vector.load %arg3[%c0_8, %c0_9] : memref<64x1xf32, #tpu.memory_space<vmem>>, vector<64x1xf32>
    %c0_10 = arith.constant 0 : index
    %c0_11 = arith.constant 0 : index
    %18 = vector.load %arg6[%c0_10, %c0_11] : memref<1x32xf32, #tpu.memory_space<vmem>>, vector<1x32xf32>
    %19 = vector.broadcast %17 : vector<64x1xf32> to vector<64x32xf32>
    %20 = vector.broadcast %18 : vector<1x32xf32> to vector<64x32xf32>
    %21 = arith.mulf %19, %20 : vector<64x32xf32>
    %22 = arith.addf %16, %21 : vector<64x32xf32>
    %c0_12 = arith.constant 0 : index
    %c0_13 = arith.constant 0 : index
    %23 = vector.load %arg7[%c0_12, %c0_13] : memref<64x32xf32, #tpu.memory_space<vmem>>, vector<64x32xf32>
    tpu.vector_store %arg7[%c0_12, %c0_13], %22 {strides = array<i32>} : memref<64x32xf32, #tpu.memory_space<vmem>>, vector<64x32xf32>,
    return
  }
  func.func @transform_0(%arg0: i32) -> (i32, i32) {
    %c0_i32 = arith.constant 0 : i32
    %c0_i32_0 = arith.constant 0 : i32
    return %arg0, %c0_i32 : i32, i32
  }
  func.func @transform_1(%arg0: i32) -> (i32, i32) {
    %c0_i32 = arith.constant 0 : i32
    %c0_i32_0 = arith.constant 0 : i32
    return %arg0, %c0_i32 : i32, i32
  }
  func.func @transform_2(%arg0: i32) -> (i32, i32) {
    %c0_i32 = arith.constant 0 : i32
    %c0_i32_0 = arith.constant 0 : i32
    return %arg0, %c0_i32 : i32, i32
  }
  func.func @transform_3(%arg0: i32) -> (i32, i32) {
    %c0_i32 = arith.constant 0 : i32
    %c0_i32_0 = arith.constant 0 : i32
    %c0_i32_1 = arith.constant 0 : i32
    return %c0_i32, %c0_i32_0 : i32, i32
  }
  func.func @transform_4(%arg0: i32) -> (i32, i32) {
    %c0_i32 = arith.constant 0 : i32
    %c0_i32_0 = arith.constant 0 : i32
    %c0_i32_1 = arith.constant 0 : i32
    return %c0_i32, %c0_i32_0 : i32, i32
  }
  func.func @transform_5(%arg0: i32) -> (i32, i32) {
    %c0_i32 = arith.constant 0 : i32
    %c0_i32_0 = arith.constant 0 : i32
    %c0_i32_1 = arith.constant 0 : i32
    return %c0_i32, %c0_i32_0 : i32, i32
  }
  func.func @transform_6(%arg0: i32) -> (i32, i32) {
    %c0_i32 = arith.constant 0 : i32
    %c0_i32_0 = arith.constant 0 : i32
    return %arg0, %c0_i32 : i32, i32
  }
}

</mosaic_0001>

<bundles_post_ra>
// kernel: custom-call.1
= control target key start
LH: loop header
LB: loop body
LE: loop exit
PB: predicated region body
PF: predicated region fallthrough
CT: control target
= control target key end

     0   :  { %s6_s0 = inlined_call_operand.vmem [shape: u32[200], index: 0, kind: output, shape index: {}]  }

// kernel: structural_positional_encoding.1
= control target key start
LH: loop header
LB: loop body
LE: loop exit
PB: predicated region body
PF: predicated region fallthrough
CT: control target
= control target key end

     0   :  { %s1491_s21 = smov 0   ;;  %s1493_s22 = smov 0   ;;  %s1714_s0 = inlined_call_operand.vmem [shape: f32[200,32], index: 0, kind: input, shape index: {}]   ;;  %s1715_s1 = inlined_call_operand.vmem [shape: s32[200,2], index: 1, kind: input, shape index: {}]   ;;  %s1716_s2 = inlined_call_operand.vmem [shape: f32[200,1], index: 2, kind: input, shape index: {}]   ;;  %s1717_s3 = inlined_call_operand.vmem [shape: f32[32,32], index: 3, kind: input, shape index: {}]   ;;  %s1718_s4 = inlined_call_operand.vmem [shape: f32[128,32], index: 4, kind: input, shape index: {}]   ;;  %s1719_s5 = inlined_call_operand.vmem [shape: f32[1,32], index: 5, kind: input, shape index: {}]   ;;  %s1720_s6 = inlined_call_operand.vmem [shape: f32[200,32], index: 6, kind: output, shape index: {}]  }
   0x1   :  { %s1495_s23 = smov 0  }
   0x2 LB: > { %s1504_s24 = sadd.s32 4294967295, %s1419_s23   ;;  %s1506_s25 = sadd.s32 1, %s1419_s23   ;;  %s1419_s23 = sphi %s1495_s23, %s1727_s23   ;;  %s1415_s22 = sphi %s1493_s22, %s1726_s22   ;;  %s1411_s21 = sphi %s1491_s21, %s1725_s21  }
   0x3   : > { %s161_s26 = ssub.s32 %s1419_s23, %s1506_s25  ;;  %s164_s27 = sadd.s32 1, %s1415_s22 }
   0x4   : > { %p162_p0 = scmp.eq.s32.totalorder %s161_s26, 0  ;;  %p174_p1 = scmp.ne.s32.totalorder %s1415_s22, %s1411_s21 }
   0x5   : > { %p175_p2 = scmp.eq.s32.totalorder %s1504_s24, 3  ;;  %p1067_p3 = scmp.ge.s32.totalorder %s1419_s23, 1 }
   0x6   : > { %s1514_s28 = scalar_select %p162_p0, %s1415_s22, %s164_s27  }
   0x7   : > { %p1516_p4 = por %p175_p2, %p174_p1  ;;  %p259_p5 = scmp.lt.s32.totalorder %s1419_s23, 5 }
   0x9   : > { %p260_p6 = pnand %p1067_p3, %p259_p5 }
   0xa   : > { %s1521_s30 = sshll.u32 (!%p260_p6), %s1504_s24, 3  ;;  %v467_v0 = vld [vmem:[%s1718_s4] sm:$0xff] (!%p260_p6)  ;;  %v468_v1 = vld [vmem:[%s1718_s4 + $0x8] sm:$0xff] (!%p260_p6)  ;;  %v469_v2 = vld [vmem:[%s1718_s4 + $0x10] sm:$0xff] (!%p260_p6)  ;;  %v1453_v3 = vmov (!%p260_p6), 0   ;;  %v1454_v19 = vmov (!%p260_p6), 1   ;;  %v377_v56 = vlaneseq (!%p260_p6) }
   0xb   : > { %263 = sbr.rel (%p260_p6) target bundleno = 450 (0x1c2), region = 44  ;;  %1361 = vset.pattern.permute.xlu1 (!%p260_p6), %v1453_v3  ;;  %1359 = vset.pattern.permute.xlu0 (!%p260_p6), %v1453_v3  ;;  %p315_p7 = scmp.lt.s32.totalorder (!%p260_p6), %s1521_s30, 24  ;;  %v1220_v4 = vpack.c.bf16 (!%p260_p6), %v468_v1, %v467_v0  ;;  %v470_v5 = vld [vmem:[%s1718_s4 + $0x18] sm:$0xff] (!%p260_p6)  ;;  %v471_v7 = vld [vmem:[%s1718_s4 + $0x20] sm:$0xff] (!%p260_p6)  ;;  %v472_v8 = vld [vmem:[%s1718_s4 + $0x28] sm:$0xff] (!%p260_p6)  ;;  %vm588_vm0 = vcmask (!%p260_p6), 261120  }
   0xc   : > { %v1224_v6 = vpack.c.bf16 (!%p260_p6), %v470_v5, %v469_v2  ;;  %v365_v9 = vld [vmem:[%s1717_s3] sm:$0xff] (!%p260_p6)  ;;  %v1228_v10 = vpack.c.bf16 (!%p260_p6), %v472_v8, %v471_v7  ;;  %v366_v11 = vld [vmem:[%s1717_s3 + $0x8] sm:$0xff] (!%p260_p6)  ;;  %v473_v15 = vld [vmem:[%s1718_s4 + $0x30] sm:$0xff] (!%p260_p6)  ;;  %v378_v59 = vand.u32 (!%p260_p6), 127, %v377_v56  ;;  %v1455_v62 = vmov (!%p260_p6), 1.0  }
   0xd   : > { %1221 = vmatprep.subr.bf16.mxu1 (!%p260_p6), %v1220_v4  ;;  %v1252_v14 = vpack.c.bf16 (!%p260_p6), %v366_v11, %v365_v9  ;;  %v474_v16 = vld [vmem:[%s1718_s4 + $0x38] sm:$0xff] (!%p260_p6)  ;;  %v475_v18 = vld [vmem:[%s1718_s4 + $0x40] sm:$0xff] (!%p260_p6)  ;;  %v476_v20 = vld [vmem:[%s1718_s4 + $0x48] sm:$0xff] (!%p260_p6) }
   0xe   : > { %1223 = vmatpush3.bf16.msra.mxu1 (!%p260_p6), %v1220_v4  ;;  %v1232_v17 = vpack.c.bf16 (!%p260_p6), %v474_v16, %v473_v15  ;;  %v367_v21 = vld [vmem:[%s1717_s3 + $0x10] sm:$0xff] (!%p260_p6)  ;;  %v368_v22 = vld [vmem:[%s1717_s3 + $0x18] sm:$0xff] (!%p260_p6)  ;;  %v1236_v25 = vpack.c.bf16 (!%p260_p6), %v476_v20, %v475_v18  ;;  %v479_v32 = vld [vmem:[%s1718_s4 + $0x60] sm:$0xff] (!%p260_p6) }
   0xf   : > { %1225 = vmatprep.subr.bf16.mxu1 (!%p260_p6), %v1224_v6  ;;  %1253 = vmatprep.subr.bf16.mxu0 (!%p260_p6), %v1252_v14  ;;  %v1256_v23 = vpack.c.bf16 (!%p260_p6), %v368_v22, %v367_v21  ;;  %v477_v27 = vld [vmem:[%s1718_s4 + $0x50] sm:$0xff] (!%p260_p6)  ;;  %v478_v28 = vld [vmem:[%s1718_s4 + $0x58] sm:$0xff] (!%p260_p6)  ;;  %v480_v33 = vld [vmem:[%s1718_s4 + $0x68] sm:$0xff] (!%p260_p6) }
  0x10   : > { %1255 = vmatpush3.bf16.msra.mxu0 (!%p260_p6), %v1252_v14  ;;  %v1240_v31 = vpack.c.bf16 (!%p260_p6), %v478_v28, %v477_v27  ;;  %v1244_v35 = vpack.c.bf16 (!%p260_p6), %v480_v33, %v479_v32  ;;  %v481_v37 = vld [vmem:[%s1718_s4 + $0x70] sm:$0xff] (!%p260_p6)  ;;  %v482_v38 = vld [vmem:[%s1718_s4 + $0x78] sm:$0xff] (!%p260_p6)  ;;  %v1099_v21 = vld [vmem:[%s1719_s5] ss:$0 sm:$0xff] (!%p260_p6) }
  0x11   : > { %1257 = vmatprep.subr.bf16.mxu0 (!%p260_p6), %v1256_v23  ;;  %v1248_v41 = vpack.c.bf16 (!%p260_p6), %v482_v38, %v481_v37 }
  0x12   : > { %s316_s15 = scalar_select %p315_p7, %s1521_s30, 24  ;;  %1227 = vmatpush3.bf16.msra.mxu1 %v1224_v6 }
  0x13   : > { %1229 = vmatprep.subr.bf16.mxu1 %v1228_v10  ;;  %s1117_s14 = sshll.u32 (%p1516_p4), %s1504_s24, 6 }
  0x14   : > { %s1545_s20 = sshll.u32 %s316_s15, 3  ;;  %1259 = vmatpush3.bf16.msra.mxu0 %v1256_v23  ;;  %s1660_s17 = scalar_lea.vmem (%p1516_p4), %s1720_s6, %s1117_s14  }
  0x15   : > { %s1554_s8 = scalar_lea.vmem %s1715_s1, %s1545_s20  ;;  %s1584_s10 = scalar_lea.vmem %s1714_s0, %s1545_s20 }
  0x16   : > { %v370_v12 = vld [vmem:[%s1554_s8 + $0x8] sm:$0xff]  ;;  %v369_v13 = vld [vmem:[%s1554_s8] sm:$0xff]  ;;  %v371_v24 = vld [vmem:[%s1554_s8 + $0x10] sm:$0xff]  ;;  %1231 = vmatpush3.bf16.msra.mxu1 %v1228_v10  ;;  %s346_s11 = scalar_lea.vmem %s1716_s2, %s1545_s20  ;;  %s307_s20 = sand.u32 1, %s1411_s21  }
  0x17   : > { %383 = vperm.xlu1 %1361, %v370_v12   ;;  %380 = vperm.xlu0 %1359, %v369_v13   ;;  %v357_v26 = vld [vmem:[%s1584_s10] sm:$0xff]  ;;  %v358_v29 = vld [vmem:[%s1584_s10 + $0x8] sm:$0xff]  ;;  %v372_v30 = vld [vmem:[%s1554_s8 + $0x18] sm:$0xff]  ;;  %s1068_s12 = sshll.u32 %s307_s20, 6  ;;  %s805_s21 = ssub.s32 (%p1516_p4), 25, %s1521_s30 }
  0x18   : > { %1233 = vmatprep.subr.bf16.mxu1 %v1232_v17  ;;  %1208 = vmatprep.mubr.msk.f32.mxu0 %vm588_vm0, %v357_v26  ;;  %v373_v34 = vld [vmem:[%s1554_s8 + $0x20] sm:$0xff]  ;;  %v359_v36 = vld [vmem:[%s1584_s10 + $0x10] sm:$0xff]  ;;  %v360_v39 = vld [vmem:[%s1584_s10 + $0x18] sm:$0xff]  ;;  %s1635_s13 = scalar_lea.vmem [#allocation2], %s1068_s12   ;;  %p806_p8 = scmp.lt.s32.totalorder (%p1516_p4), %s805_s21, 8 }
  0x19   : > { %1209 = vmatmul.mubr.msk.f32.vlgmr.msra.gmra.mrb[0].mxu0 %vm588_vm0, %v358_v29  ;;  %v374_v40 = vld [vmem:[%s1554_s8 + $0x28] sm:$0xff]  ;;  %v375_v42 = vld [vmem:[%s1554_s8 + $0x30] sm:$0xff]  ;;  %v361_v43 = vld [vmem:[%s1584_s10 + $0x20] sm:$0xff] }
  0x1a   : > { %1235 = vmatpush3.bf16.msra.mxu1 %v1232_v17  ;;  %1211 = vmatprep.mubr.msk.f32.mxu0 %vm588_vm0, %v359_v36  ;;  %v362_v44 = vld [vmem:[%s1584_s10 + $0x28] sm:$0xff]  ;;  %v376_v45 = vld [vmem:[%s1554_s8 + $0x38] sm:$0xff]  ;;  %v363_v46 = vld [vmem:[%s1584_s10 + $0x30] sm:$0xff] }
  0x1b   : > { %1362 = vset.pattern.permute.xlu1 %v1454_v19  ;;  %1360 = vset.pattern.permute.xlu0 %v1454_v19  ;;  %v718_v47 = vld [vmem:[%s346_s11] sm:$0xff]  ;;  %v364_v48 = vld [vmem:[%s1584_s10 + $0x38] sm:$0xff]  ;;  %v720_v49 = vld [vmem:[%s346_s11 + $0x10] sm:$0xff] }
  0x1c   : > { %415 = vperm.xlu1 %1362, %v370_v12   ;;  %412 = vperm.xlu0 %1360, %v369_v13   ;;  %v721_v50 = vld [vmem:[%s346_s11 + $0x18] sm:$0xff]  ;;  %v723_v51 = vld [vmem:[%s346_s11 + $0x28] sm:$0xff]  ;;  %v722_v54 = vld [vmem:[%s346_s11 + $0x20] sm:$0xff] }
  0x1d   : > { %1237 = vmatprep.subr.bf16.mxu1 %v1236_v25  ;;  %1212 = vmatmul.mubr.msk.f32.gmra.mrb[2].mxu0 %vm588_vm0, %v360_v39  ;;  %v725_v52 = vld [vmem:[%s346_s11 + $0x38] sm:$0xff]  ;;  %v719_v53 = vld [vmem:[%s346_s11 + $0x8] sm:$0xff]  ;;  %v724_v55 = vld [vmem:[%s346_s11 + $0x30] sm:$0xff] }
  0x1e   : > { %1239 = vmatpush3.bf16.msra.mxu1 %v1236_v25  ;;  %1214 = vmatprep.mubr.msk.f32.mxu0 %vm588_vm0, %v361_v43 }
  0x1f   : > { %1241 = vmatprep.subr.bf16.mxu1 %v1240_v31 }
  0x20   : > { %1363 = vset.pattern.permute.xlu1 %v1453_v3  ;;  %418 = vperm.xlu0 %1360, %v371_v24  }
  0x21   : > { %386 = vperm.xlu1 %1363, %v371_v24   ;;  %1215 = vmatmul.mubr.msk.f32.gmra.mrb[4].mxu0 %vm588_vm0, %v362_v44 }
  0x22   : > { %1243 = vmatpush3.bf16.msra.mxu1 %v1240_v31  ;;  %1217 = vmatprep.mubr.msk.f32.mxu0 %vm588_vm0, %v363_v46 }
  0x23   : > { %1245 = vmatprep.subr.bf16.mxu1 %v1244_v35 }
  0x24   : > { %421 = vperm.xlu0 %1360, %v372_v30  }
  0x25   : > { %389 = vperm.xlu1 %1363, %v372_v30   ;;  %1218 = vmatmul.mubr.msk.f32.gmra.mrb[6].mxu0 %vm588_vm0, %v364_v48 }
  0x26   : > { %1247 = vmatpush3.bf16.msra.mxu1 %v1244_v35 }
  0x27   : > { %1249 = vmatprep.subr.bf16.mxu1 %v1248_v41 }
  0x28   : > { %424 = vperm.xlu0 %1360, %v373_v34  }
  0x29   : > { %392 = vperm.xlu1 %1363, %v373_v34  }
  0x2a   : > { %1251 = vmatpush3.bf16.msra.mxu1 %v1248_v41 }
  0x2c   : > { %427 = vperm.xlu0 %1360, %v374_v40  }
  0x2d   : > { %395 = vperm.xlu1 %1363, %v374_v40  }
  0x30   : > { %430 = vperm.xlu0 %1360, %v375_v42  }
  0x31   : > { %398 = vperm.xlu1 %1363, %v375_v42  }
  0x34   : > { %433 = vperm.xlu0 %1360, %v376_v45  }
  0x35   : > { %401 = vperm.xlu1 %1363, %v376_v45  }
  0x38   : > { %1364 = vset.pattern.permute.xlu0 %v1453_v3 }
  0x39   : > { %729 = vperm.xlu1 %1363, %v718_v47   ;;  %734 = vperm.xlu0 %1364, %v719_v53  }
  0x3d   : > { %739 = vperm.xlu1 %1363, %v720_v49   ;;  %749 = vperm.xlu0 %1364, %v722_v54  }
  0x41   : > { %744 = vperm.xlu1 %1363, %v721_v50   ;;  %759 = vperm.xlu0 %1364, %v724_v55  }
  0x45   : > { %754 = vperm.xlu1 %1363, %v723_v51  }
  0x49   : > { %764 = vperm.xlu1 %1363, %v725_v52  }
  0x96   : > { %v384_v57 = vpop.permute.xlu1 %383  ;;  %v381_v58 = vpop.permute.xlu0 %380 }
  0x97   : > { %vm404_vm1 = vcmp.eq.s32.totalorder %v378_v59, %v384_v57  ;;  %vm403_vm4 = vcmp.eq.s32.totalorder %v378_v59, %v381_v58 }
  0x9b   : > { %v416_v60 = vpop.permute.xlu1 %415  ;;  %v413_v61 = vpop.permute.xlu0 %412 }
  0x9c   : > { %vm436_vm2 = vcmp.eq.s32.totalorder %v378_v59, %v416_v60  ;;  %vm435_vm3 = vcmp.eq.s32.totalorder %v378_v59, %v413_v61 }
  0x9d   : > { %vm444_vm5 = vmor %vm404_vm1, %vm436_vm2 }
  0x9e   : > { %vm443_vm6 = vmor %vm403_vm4, %vm435_vm3 }
  0x9f   : > { %1188 = vmatprep.mubr.msk.f32.mxu1 %vm443_vm6, %v1455_v62  ;;  %v419_v63 = vpop.permute.xlu0 %418 }
  0xa0   : > { %1189 = vmatmul.mubr.msk.f32.vlgmr.msra.gmra.mrb[0].mxu1 %vm444_vm5, %v1455_v62  ;;  %vm437_vm7 = vcmp.eq.s32.totalorder %v378_v59, %v419_v63  ;;  %v387_v0 = vpop.permute.xlu1 %386 }
  0xa1   : > { %vm405_vm8 = vcmp.eq.s32.totalorder %v378_v59, %v387_v0 }
  0xa2   : > { %vm445_vm9 = vmor %vm405_vm8, %vm437_vm7 }
  0xa3   : > { %1191 = vmatprep.mubr.msk.f32.mxu1 %vm445_vm9, %v1455_v62  ;;  %v422_v1 = vpop.permute.xlu0 %421 }
  0xa4   : > { %vm438_vm10 = vcmp.eq.s32.totalorder %v378_v59, %v422_v1  ;;  %v390_v2 = vpop.permute.xlu1 %389 }
  0xa5   : > { %vm406_vm11 = vcmp.eq.s32.totalorder %v378_v59, %v390_v2 }
  0xa6   : > { %vm446_vm12 = vmor %vm406_vm11, %vm438_vm10 }
  0xa7   : > { %1192 = vmatmul.mubr.msk.f32.gmra.mrb[2].mxu1 %vm446_vm12, %v1455_v62  ;;  %v425_v3 = vpop.permute.xlu0 %424 }
  0xa8   : > { %vm439_vm13 = vcmp.eq.s32.totalorder %v378_v59, %v425_v3  ;;  %v393_v4 = vpop.permute.xlu1 %392 }
  0xa9   : > { %vm407_vm14 = vcmp.eq.s32.totalorder %v378_v59, %v393_v4 }
  0xaa   : > { %vm447_vm15 = vmor %vm407_vm14, %vm439_vm13 }
  0xab   : > { %1194 = vmatprep.mubr.msk.f32.mxu1 %vm447_vm15, %v1455_v62  ;;  %v428_v5 = vpop.permute.xlu0 %427 }
  0xac   : > { %vm440_vm1 = vcmp.eq.s32.totalorder %v378_v59, %v428_v5  ;;  %v396_v6 = vpop.permute.xlu1 %395 }
  0xad   : > { %vm408_vm2 = vcmp.eq.s32.totalorder %v378_v59, %v396_v6 }
  0xae   : > { %vm448_vm3 = vmor %vm408_vm2, %vm440_vm1 }
  0xaf   : > { %1195 = vmatmul.mubr.msk.f32.gmra.mrb[4].mxu1 %vm448_vm3, %v1455_v62  ;;  %v431_v7 = vpop.permute.xlu0 %430 }
  0xb0   : > { %vm441_vm4 = vcmp.eq.s32.totalorder %v378_v59, %v431_v7  ;;  %v399_v8 = vpop.permute.xlu1 %398 }
  0xb1   : > { %vm409_vm5 = vcmp.eq.s32.totalorder %v378_v59, %v399_v8 }
  0xb2   : > { %vm449_vm6 = vmor %vm409_vm5, %vm441_vm4 }
  0xb3   : > { %1197 = vmatprep.mubr.msk.f32.mxu1 %vm449_vm6, %v1455_v62  ;;  %v434_v9 = vpop.permute.xlu0 %433 }
  0xb4   : > { %vm442_vm7 = vcmp.eq.s32.totalorder %v378_v59, %v434_v9  ;;  %v402_v10 = vpop.permute.xlu1 %401 }
  0xb5   : > { %vm410_vm8 = vcmp.eq.s32.totalorder %v378_v59, %v402_v10 }
  0xb6   : > { %vm450_vm9 = vmor %vm410_vm8, %vm442_vm7 }
  0xb7   : > { %1198 = vmatmul.mubr.msk.f32.gmra.mrb[6].mxu1 %vm450_vm9, %v1455_v62 }
  0xb8   : > { %v730_v19 = vpop.permute.xlu1 %729  ;;  %v735_v20 = vpop.permute.xlu0 %734 }
  0xb9   : > { %v774_v23 = vmul.f32 %v1099_v21, %v735_v20  ;;  %v773_v27 = vmul.f32 %v1099_v21, %v730_v19 }
  0xbc   : > { %v740_v22 = vpop.permute.xlu1 %739  ;;  %v750_v41 = vpop.permute.xlu0 %749 }
  0xbd   : > { %v775_v36 = vmul.f32 %v1099_v21, %v740_v22  ;;  %v777_v42 = vmul.f32 %v1099_v21, %v750_v41 }
  0xc0   : > { %v745_v31 = vpop.permute.xlu1 %744  ;;  %v760_v51 = vpop.permute.xlu0 %759 }
  0xc1   : > { %v776_v33 = vmul.f32 %v1099_v21, %v745_v31  ;;  %v779_v56 = vmul.f32 %v1099_v21, %v760_v51 }
  0xc4   : > { %v755_v40 = vpop.permute.xlu1 %754 }
  0xc5   : > { %v778_v44 = vmul.f32 %v1099_v21, %v755_v40 }
  0xc8   : > { %v765_v50 = vpop.permute.xlu1 %764 }
  0xc9   : > { %v780_v53 = vmul.f32 %v1099_v21, %v765_v50 }
  0xec   : > { %v1210_v11 = vpop.f32.mrb[0].mxu0 }
  0xed   : > { %v679_v12 = vpop.f32.mrb[1].mxu0 }
  0xf0   : > { %v1213_v13 = vpop.f32.mrb[2].mxu0 }
  0xf1   : > { %v689_v14 = vpop.f32.mrb[3].mxu0 }
  0xf4   : > { %v1216_v15 = vpop.f32.mrb[4].mxu0 }
  0xf5   : > { %v699_v16 = vpop.f32.mrb[5].mxu0 }
  0xf8   : > { %v1219_v17 = vpop.f32.mrb[6].mxu0 }
  0xf9   : > { %v709_v18 = vpop.f32.mrb[7].mxu0 }
 0x173   : > { %v1190_v24 = vpop.f32.mrb[0].mxu1 }
 0x174   : > { %v685_v25 = vadd.f32 %v1210_v11, %v1190_v24  ;;  %v549_v26 = vpop.f32.mrb[1].mxu1 }
 0x175   : > { %v680_v28 = vadd.f32 %v679_v12, %v549_v26 }
 0x176   : > { %v782_v29 = vadd.f32 %v774_v23, %v685_v25 }
 0x177   : > { %v781_v30 = vadd.f32 %v773_v27, %v680_v28 }
 0x178   : > { %790 = vst.msk [vmem:[%s1635_s13 + $0x8] sm:$0xff] %vm588_vm0, %v782_v29 }
 0x179   : > { %789 = vst.msk [vmem:[%s1635_s13] sm:$0xff] %vm588_vm0, %v781_v30 }
 0x17a   : > { %v1193_v32 = vpop.f32.mrb[2].mxu1 }
 0x17b   : > { %v695_v34 = vadd.f32 %v1213_v13, %v1193_v32  ;;  %v559_v35 = vpop.f32.mrb[3].mxu1 }
 0x17c   : > { %v690_v37 = vadd.f32 %v689_v14, %v559_v35 }
 0x17d   : > { %v784_v38 = vadd.f32 %v776_v33, %v695_v34 }
 0x17e   : > { %v783_v39 = vadd.f32 %v775_v36, %v690_v37 }
 0x17f   : > { %792 = vst.msk [vmem:[%s1635_s13 + $0x18] sm:$0xff] %vm588_vm0, %v784_v38 }
 0x180   : > { %791 = vst.msk [vmem:[%s1635_s13 + $0x10] sm:$0xff] %vm588_vm0, %v783_v39 }
 0x182   : > { %v1196_v43 = vpop.f32.mrb[4].mxu1 }
 0x183   : > { %v705_v45 = vadd.f32 %v1216_v15, %v1196_v43  ;;  %v569_v46 = vpop.f32.mrb[5].mxu1 }
 0x184   : > { %v700_v47 = vadd.f32 %v699_v16, %v569_v46 }
 0x185   : > { %v786_v48 = vadd.f32 %v778_v44, %v705_v45 }
 0x186   : > { %v785_v49 = vadd.f32 %v777_v42, %v700_v47 }
 0x187   : > { %794 = vst.msk [vmem:[%s1635_s13 + $0x28] sm:$0xff] %vm588_vm0, %v786_v48 }
 0x188   : > { %793 = vst.msk [vmem:[%s1635_s13 + $0x20] sm:$0xff] %vm588_vm0, %v785_v49 }
 0x18a   : > { %v1199_v52 = vpop.f32.mrb[6].mxu1  ;;  %803 = sbr.rel (!%p1516_p4) target bundleno = 450 (0x1c2), region = 48 }
 0x18b   : > { %v715_v54 = vadd.f32 %v1219_v17, %v1199_v52  ;;  %v579_v55 = vpop.f32.mrb[7].mxu1 }
 0x18c   : > { %v710_v57 = vadd.f32 %v709_v18, %v579_v55 }
 0x18d   : > { %v788_v58 = vadd.f32 %v780_v53, %v715_v54 }
 0x18e   : > { %v787_v59 = vadd.f32 %v779_v56, %v710_v57 }
 0x18f   : > { %796 = vst.msk [vmem:[%s1635_s13 + $0x38] sm:$0xff] %vm588_vm0, %v788_v58 }
 0x190   : > { %795 = vst.msk [vmem:[%s1635_s13 + $0x30] sm:$0xff] %vm588_vm0, %v787_v59 }
 0x191   : > { %s1729_s21 = smov (!%p806_p8, %s805_s21), 8 }
 0x192   : > { %s1102_s18 = sshll.u32 %s1729_s21, 7 }
 0x193   : > { %p1105_p9 = scmp.eq.s32.totalorder %s1102_s18, 0 }
 0x194   : > { %s1666_s19 = sshrl.u32 (!%p1105_p9), %s1729_s21, 3 }
 0x195   : > { %814 = sbr.rel (%p1105_p9) target bundleno = 450 (0x1c2), region = 52  ;;  %p1106_p10 = scmp.le.s32.totalorder (!%p1105_p9), %s1666_s19, 0 }
 0x19c   : > { %1008 = sbr.rel (%p1106_p10) target bundleno = 429 (0x1ad), region = 134  ;;  %s1722_s24 = smov (!%p1106_p10), %s1660_s17 }
 0x19d   : > { %s1723_s29 = smov (!%p1106_p10), %s1635_s13  ;;  %s1675_s30 = smov (!%p1106_p10), 0  }
 0x19e   : > { %s1677_s23 = smov (!%p1106_p10), 0  }
 0x1a3 LB: >> { %v890_v60 = vld [vmem:[%s1427_s29] sm:$0xff]  ;;  %v892_v61 = vld [vmem:[%s1427_s29 + $0x8] sm:$0xff]  ;;  %v894_v62 = vld [vmem:[%s1427_s29 + $0x10] sm:$0xff]  ;;  %s906_s26 = sadd.s32 1, %s1431_s30  ;;  %s884_s23 = sadd.s32 1, %s1435_s23   ;;  %s1435_s23 = sphi %s1677_s23, %s884_s23   ;;  %s1431_s30 = sphi %s1675_s30, %s1724_s30   ;;  %s1427_s29 = sphi %s1723_s29, %s911_s29   ;;  %s1423_s24 = sphi %s1722_s24, %s912_s24  }
 0x1a4   : >> { %891 = vst [vmem:[%s1423_s24] sm:$0xff] %v890_v60  ;;  %893 = vst [vmem:[%s1423_s24 + $0x8] sm:$0xff] %v892_v61  ;;  %v896_v63 = vld [vmem:[%s1427_s29 + $0x18] sm:$0xff]  ;;  %v898_v0 = vld [vmem:[%s1427_s29 + $0x20] sm:$0xff]  ;;  %p907_p11 = scmp.ge.s32.totalorder %s906_s26, %s1666_s19  ;;  %p883_p12 = scmp.ge.s32.totalorder %s884_s23, %s1666_s19 }
 0x1a5   : >> { %895 = vst [vmem:[%s1423_s24 + $0x10] sm:$0xff] %v894_v62  ;;  %v900_v1 = vld [vmem:[%s1427_s29 + $0x28] sm:$0xff]  ;;  %897 = vst [vmem:[%s1423_s24 + $0x18] sm:$0xff] %v896_v63  ;;  %v902_v2 = vld [vmem:[%s1427_s29 + $0x30] sm:$0xff] }
 0x1a6   : >> { %899 = vst [vmem:[%s1423_s24 + $0x20] sm:$0xff] %v898_v0  ;;  %901 = vst [vmem:[%s1423_s24 + $0x28] sm:$0xff] %v900_v1  ;;  %v904_v3 = vld [vmem:[%s1427_s29 + $0x38] sm:$0xff]  ;;  %s1731_s26 = smov (%p907_p11, %s906_s26), 0  ;;  %886 = sbr.rel (!%p883_p12) target bundleno = 419 (0x1a3), region = 140 }
 0x1a7   : >> { %903 = vst [vmem:[%s1423_s24 + $0x30] sm:$0xff] %v902_v2  ;;  %905 = vst [vmem:[%s1423_s24 + $0x38] sm:$0xff] %v904_v3  ;;  %s1107_s27 = sshll.u32 %s1731_s26, 6  ;;  %s1724_s30 = smov %s1731_s26 }
 0x1a8   : >> { %s911_s29 = scalar_lea.vmem %s1635_s13, %s1107_s27 [#allocation2]   ;;  %s912_s24 = scalar_lea.vmem %s1660_s17, %s1107_s27  }
 0x1ad PF: > { %s1696_s7 = sand.u32 7, %s1729_s21   ;;  %s1118_s9 = sshll.u32 %s1666_s19, 6 }
 0x1ae   : > { %s917_s11 = scalar_lea.vmem %s1635_s13, %s1118_s9 [#allocation2]   ;;  %s919_s20 = scalar_lea.vmem %s1660_s17, %s1118_s9  }
 0x1af   : > { %p1112_p13 = scmp.le.s32.totalorder %s1696_s7, 0 }
 0x1b0   : > { %s1437_s8 = smov (!%p1112_p13), %s919_s20   ;;  %s1441_s10 = smov (!%p1112_p13), %s917_s11  }
 0x1b1   : > { %1022 = sbr.rel (%p1112_p13) target bundleno = 450 (0x1c2), region = 145  ;;  %s1445_s12 = smov (!%p1112_p13), 0  }
 0x1b2   : > { %s1449_s14 = smov (!%p1112_p13), 0  }
 0x1b8 LB: >> { %v929_v4 = vld [vmem:[%s1443_s10] sm:$0xff]  ;;  %s931_s21 = sadd.s32 1, %s1447_s12  ;;  %s923_s14 = sadd.s32 1, %s1451_s14   ;;  %s1451_s14 = sphi %s1449_s14, %s923_s14   ;;  %s1447_s12 = sphi %s1445_s12, %s1446_s12   ;;  %s1443_s10 = sphi %s1441_s10, %s936_s10   ;;  %s1439_s8 = sphi %s1437_s8, %s937_s8  }
 0x1b9   : >> { %930 = vst [vmem:[%s1439_s8] sm:$0xff] %v929_v4  ;;  %p932_p0 = scmp.ge.s32.totalorder %s931_s21, %s1696_s7  ;;  %p922_p1 = scmp.ge.s32.totalorder %s923_s14, %s1696_s7 }
 0x1bb   : >> { %s1733_s21 = smov (%p932_p0, %s931_s21), 0  ;;  %925 = sbr.rel (!%p922_p1) target bundleno = 440 (0x1b8), region = 151 }
 0x1bc   : >> { %s1113_s13 = sshll.u32 %s1733_s21, 3  ;;  %s1446_s12 = smov %s1733_s21  }
 0x1bd   : >> { %s936_s10 = scalar_lea.vmem %s917_s11, %s1113_s13 [#allocation2]   ;;  %s937_s8 = scalar_lea.vmem %s919_s20, %s1113_s13  }
 0x1c2 PF: > { %p13_p2 = scmp.ge.s32.totalorder %s1506_s25, 6   ;;  %s1725_s21 = smov %s1415_s22 }
 0x1c3   : > { %s1726_s22 = smov %s1514_s28  ;;  %s1727_s23 = smov %s1506_s25 }
 0x1c4   :  { %15 = sbr.rel (!%p13_p2) target bundleno = 2 (0x2), region = 162 }

</bundles_post_ra>
